<compile_context>
chip_gen: v5e
topology: v5e:2x2
jax: 0.10.0
libtpu: 0.0.40
codegen_flags: <defaults>
</compile_context>

<pallas_src>
import functools

import jax
import jax.numpy as jnp
import numpy as np
from jax.experimental import pallas as pl
from jax.experimental.pallas import tpu as pltpu

HIDDEN = 128  # hidden width of both MLPs (fixed by the PyTorch module)


# ---------------------------------------------------------------------------
# Parameter init (deterministic; mimics torch orthogonal_ with gain sqrt(2),
# zero biases).
# ---------------------------------------------------------------------------
def orthogonal_init(key, in_dim, out_dim, gain):
    """torch-style orthogonal_ on the (out_dim, in_dim) weight, returned
    transposed as (in_dim, out_dim) for x @ W usage in the kernel."""
    rows, cols = out_dim, in_dim
    flat = jax.random.normal(key, (rows, cols), dtype=jnp.float32)
    if rows < cols:
        flat = flat.T                      # QR wants tall-skinny
    q, r = jnp.linalg.qr(flat)
    d = jnp.sign(jnp.diagonal(r))
    d = jnp.where(d == 0, 1.0, d)
    q = q * d[None, :]                     # sign correction (columns of q)
    if rows < cols:
        q = q.T
    w = gain * q                           # (out_dim, in_dim), like torch
    return w.T                             # (in_dim, out_dim)


def make_params(key, input_size, output_size):
    ks = jax.random.split(key, 5)
    g = float(np.sqrt(2.0))
    return {
        # predictor: in -> 128 -> 128 -> out
        "pw0": orthogonal_init(ks[0], input_size, HIDDEN, g),
        "pb0": jnp.zeros((1, HIDDEN), jnp.float32),
        "pw1": orthogonal_init(ks[1], HIDDEN, HIDDEN, g),
        "pb1": jnp.zeros((1, HIDDEN), jnp.float32),
        "pw2": orthogonal_init(ks[2], HIDDEN, output_size, g),
        "pb2": jnp.zeros((1, output_size), jnp.float32),
        # target: in -> 128 -> out
        "tw0": orthogonal_init(ks[3], input_size, HIDDEN, g),
        "tb0": jnp.zeros((1, HIDDEN), jnp.float32),
        "tw1": orthogonal_init(ks[4], HIDDEN, output_size, g),
        "tb1": jnp.zeros((1, output_size), jnp.float32),
    }


# ---------------------------------------------------------------------------
# Pallas kernel: fused predictor + target forward for one batch tile.
# ---------------------------------------------------------------------------
def rnd_kernel(x_ref,
               w0_ref, b0_ref,            # fused L0 (predictor | target), (in_pad, 256)
               pw1_ref, pb1_ref,          # predictor L1, (128, 128)
               pw2_ref, pb2_ref,          # predictor L2, (128, out_pad)
               tw1_ref, tb1_ref,          # target  L1, (128, out_pad)
               out_ref,                   # (block_b, 2*out_pad)  [pred | targ]
               *, out_pad):
    x = x_ref[...]

    # ---- fused first layer (shared input x): one N=256 MXU matmul ----
    h0 = jnp.dot(x, w0_ref[...], preferred_element_type=jnp.float32) + b0_ref[...]
    h0 = jnp.maximum(h0, 0.0)
    hp = h0[:, :HIDDEN]            # predictor hidden-1   (128-lane aligned slice)
    ht = h0[:, HIDDEN:]            # target hidden

    # ---- predictor tail: Linear -> ReLU -> Linear ----
    hp = jnp.dot(hp, pw1_ref[...], preferred_element_type=jnp.float32) + pb1_ref[...]
    hp = jnp.maximum(hp, 0.0)
    pred = jnp.dot(hp, pw2_ref[...], preferred_element_type=jnp.float32) + pb2_ref[...]

    # ---- target tail: Linear ----
    targ = jnp.dot(ht, tw1_ref[...], preferred_element_type=jnp.float32) + tb1_ref[...]

    # lane-dense, 128-aligned stores into the combined output
    out_ref[:, :out_pad] = pred.astype(out_ref.dtype)
    out_ref[:, out_pad:] = targ.astype(out_ref.dtype)


# ---------------------------------------------------------------------------
# Wrapper: padding / packing + pallas_call.
# ---------------------------------------------------------------------------
def _round_up(n, m):
    return ((n + m - 1) // m) * m


def _pad2d(a, rows, cols):
    return jnp.pad(a, ((0, rows - a.shape[0]), (0, cols - a.shape[1])))


def rnd_forward(params, x, *, block_b=None):
    B, input_size = x.shape
    output_size = params["pw2"].shape[1]

    in_pad = _round_up(input_size, 128)     # lane-dense input feature dim
    out_pad = _round_up(output_size, 128)   # lane-dense output feature dim

    # Batch tile: whole (8-padded) batch for small B, capped at 512 rows.
    b8 = _round_up(max(B, 1), 8)
    if block_b is None:
        block_b = min(b8, 512)
    block_b = _round_up(block_b, 8)
    B_pad = _round_up(b8, block_b)

    # ---- pack / zero-pad weights once (XLA side) ----
    w0 = jnp.concatenate([_pad2d(params["pw0"], in_pad, HIDDEN),
                          _pad2d(params["tw0"], in_pad, HIDDEN)], axis=1)   # (in_pad, 256)
    b0 = jnp.concatenate([params["pb0"], params["tb0"]], axis=1)            # (1, 256)
    pw1, pb1 = params["pw1"], params["pb1"]                                 # (128,128),(1,128)
    pw2 = _pad2d(params["pw2"], HIDDEN, out_pad)                            # (128, out_pad)
    pb2 = _pad2d(params["pb2"], 1, out_pad)
    tw1 = _pad2d(params["tw1"], HIDDEN, out_pad)
    tb1 = _pad2d(params["tb1"], 1, out_pad)
    weights = [w0, b0, pw1, pb1, pw2, pb2, tw1, tb1]

    # zero-pad batch rows and feature columns of x (zeros contribute nothing)
    x_p = jnp.pad(x.astype(jnp.float32),
                  ((0, B_pad - B), (0, in_pad - input_size)))

    def resident(a):
        # whole (small) weight/bias resident in VMEM for every grid step
        return pl.BlockSpec(a.shape, lambda i: (0, 0))

    grid = (B_pad // block_b,)

    out = pl.pallas_call(
        functools.partial(rnd_kernel, out_pad=out_pad),
        out_shape=jax.ShapeDtypeStruct((B_pad, 2 * out_pad), jnp.float32),
        grid_spec=pltpu.PrefetchScalarGridSpec(
            num_scalar_prefetch=0,
            grid=grid,
            in_specs=[pl.BlockSpec((block_b, in_pad), lambda i: (i, 0))]
                     + [resident(a) for a in weights],
            out_specs=pl.BlockSpec((block_b, 2 * out_pad), lambda i: (i, 0)),
        ),
        compiler_params=pltpu.CompilerParams(
            dimension_semantics=("parallel",)),
    )(x_p, *weights)

    pred = out[:B, :output_size]
    targ = out[:B, out_pad:out_pad + output_size]
    return pred, targ


# ---------------------------------------------------------------------------
# Pure-numpy reference of the PyTorch forward (exact f32, no MXU).
# ---------------------------------------------------------------------------
def rnd_forward_ref(params, x):
    P = {k: np.asarray(v, np.float32) for k, v in params.items()}
    xn = np.asarray(x, np.float32)
    relu = lambda a: np.maximum(a, 0.0)
    h = relu(xn @ P["pw0"] + P["pb0"])
    h = relu(h @ P["pw1"] + P["pb1"])
    pred = h @ P["pw2"] + P["pb2"]
    t = relu(xn @ P["tw0"] + P["tb0"])
    targ = t @ P["tw1"] + P["tb1"]
    return pred, targ


if __name__ == "__main__":
    key = jax.random.PRNGKey(0)
    k_param, k_x = jax.random.split(key)

    input_size = 32
    output_size = 32
    batch = 16          # small test case -> single grid step, whole batch in one tile

    params = make_params(k_param, input_size, output_size)
    x = jax.random.normal(k_x, (batch, input_size), dtype=jnp.float32)

    pred, targ = rnd_forward(params, x)
    pred = jax.block_until_ready(pred)
    targ = jax.block_until_ready(targ)

    pred_ref, targ_ref = rnd_forward_ref(params, x)
    np.testing.assert_allclose(np.asarray(pred), pred_ref, rtol=1e-3, atol=1e-3)
    np.testing.assert_allclose(np.asarray(targ), targ_ref, rtol=1e-3, atol=1e-3)

    print("KERNEL_OK")
</pallas_src>

<mosaic_0001>
module attributes {stable_mosaic.version = 11 : i64} {
  func.func @rnd_kernel(%arg0: i32, %arg1: memref<16x128xf32, #tpu.memory_space<vmem>>, %arg2: memref<128x256xf32, #tpu.memory_space<vmem>>, %arg3: memref<1x256xf32, #tpu.memory_space<vmem>>, %arg4: memref<128x128xf32, #tpu.memory_space<vmem>>, %arg5: memref<1x128xf32, #tpu.memory_space<vmem>>, %arg6: memref<128x128xf32, #tpu.memory_space<vmem>>, %arg7: memref<1x128xf32, #tpu.memory_space<vmem>>, %arg8: memref<128x128xf32, #tpu.memory_space<vmem>>, %arg9: memref<1x128xf32, #tpu.memory_space<vmem>>, %arg10: memref<16x256xf32, #tpu.memory_space<vmem>>) attributes {dimension_semantics = [#tpu.dimension_semantics<parallel>], iteration_bounds = array<i64: 1>, scalar_prefetch = 0 : i64, scratch_operands = 0 : i64, tpu.core_type = #tpu.core_type<tc>, window_params = [{transform_indices = @transform_0, window_bounds = array<i64: 16, 128>}, {pipeline_mode = #tpu.pipeline_mode<synchronous>, transform_indices = @transform_1, window_bounds = array<i64: 128, 256>}, {pipeline_mode = #tpu.pipeline_mode<synchronous>, transform_indices = @transform_2, window_bounds = array<i64: 1, 256>}, {pipeline_mode = #tpu.pipeline_mode<synchronous>, transform_indices = @transform_3, window_bounds = array<i64: 128, 128>}, {pipeline_mode = #tpu.pipeline_mode<synchronous>, transform_indices = @transform_4, window_bounds = array<i64: 1, 128>}, {pipeline_mode = #tpu.pipeline_mode<synchronous>, transform_indices = @transform_5, window_bounds = array<i64: 128, 128>}, {pipeline_mode = #tpu.pipeline_mode<synchronous>, transform_indices = @transform_6, window_bounds = array<i64: 1, 128>}, {pipeline_mode = #tpu.pipeline_mode<synchronous>, transform_indices = @transform_7, window_bounds = array<i64: 128, 128>}, {pipeline_mode = #tpu.pipeline_mode<synchronous>, transform_indices = @transform_8, window_bounds = array<i64: 1, 128>}, {transform_indices = @transform_9, window_bounds = array<i64: 16, 256>}]} {
    %c0 = arith.constant 0 : index
    %c0_0 = arith.constant 0 : index
    %0 = vector.load %arg1[%c0, %c0_0] : memref<16x128xf32, #tpu.memory_space<vmem>>, vector<16x128xf32>
    %c0_1 = arith.constant 0 : index
    %c0_2 = arith.constant 0 : index
    %1 = vector.load %arg2[%c0_1, %c0_2] : memref<128x256xf32, #tpu.memory_space<vmem>>, vector<128x256xf32>
    %cst = arith.constant dense<0.000000e+00> : vector<16x256xf32>
    %2 = tpu.matmul %0, %1, %cst {dimension_numbers = #tpu.dot_dimension_numbers<[1], [0], [0], [1], [0, 0, 1, 1], [], []>} : vector<16x128xf32>, vector<128x256xf32>, vector<16x256xf32> -> vector<16x256xf32>
    %c0_3 = arith.constant 0 : index
    %c0_4 = arith.constant 0 : index
    %3 = vector.load %arg3[%c0_3, %c0_4] : memref<1x256xf32, #tpu.memory_space<vmem>>, vector<1x256xf32>
    %4 = vector.broadcast %3 : vector<1x256xf32> to vector<16x256xf32>
    %5 = arith.addf %2, %4 : vector<16x256xf32>
    %cst_5 = arith.constant 0.000000e+00 : f32
    %6 = vector.broadcast %cst_5 : f32 to vector<16x256xf32>
    %7 = arith.maximumf %5, %6 : vector<16x256xf32>
    %8 = vector.extract_strided_slice %7 {offsets = [0, 0], sizes = [16, 128], strides = [1, 1]} : vector<16x256xf32> to vector<16x128xf32>
    %9 = vector.extract_strided_slice %7 {offsets = [0, 128], sizes = [16, 128], strides = [1, 1]} : vector<16x256xf32> to vector<16x128xf32>
    %c0_6 = arith.constant 0 : index
    %c0_7 = arith.constant 0 : index
    %10 = vector.load %arg4[%c0_6, %c0_7] : memref<128x128xf32, #tpu.memory_space<vmem>>, vector<128x128xf32>
    %cst_8 = arith.constant dense<0.000000e+00> : vector<16x128xf32>
    %11 = tpu.matmul %8, %10, %cst_8 {dimension_numbers = #tpu.dot_dimension_numbers<[1], [0], [0], [1], [0, 0, 1, 1], [], []>} : vector<16x128xf32>, vector<128x128xf32>, vector<16x128xf32> -> vector<16x128xf32>
    %c0_9 = arith.constant 0 : index
    %c0_10 = arith.constant 0 : index
    %12 = vector.load %arg5[%c0_9, %c0_10] : memref<1x128xf32, #tpu.memory_space<vmem>>, vector<1x128xf32>
    %13 = vector.broadcast %12 : vector<1x128xf32> to vector<16x128xf32>
    %14 = arith.addf %11, %13 : vector<16x128xf32>
    %cst_11 = arith.constant 0.000000e+00 : f32
    %15 = vector.broadcast %cst_11 : f32 to vector<16x128xf32>
    %16 = arith.maximumf %14, %15 : vector<16x128xf32>
    %c0_12 = arith.constant 0 : index
    %c0_13 = arith.constant 0 : index
    %17 = vector.load %arg6[%c0_12, %c0_13] : memref<128x128xf32, #tpu.memory_space<vmem>>, vector<128x128xf32>
    %cst_14 = arith.constant dense<0.000000e+00> : vector<16x128xf32>
    %18 = tpu.matmul %16, %17, %cst_14 {dimension_numbers = #tpu.dot_dimension_numbers<[1], [0], [0], [1], [0, 0, 1, 1], [], []>} : vector<16x128xf32>, vector<128x128xf32>, vector<16x128xf32> -> vector<16x128xf32>
    %c0_15 = arith.constant 0 : index
    %c0_16 = arith.constant 0 : index
    %19 = vector.load %arg7[%c0_15, %c0_16] : memref<1x128xf32, #tpu.memory_space<vmem>>, vector<1x128xf32>
    %20 = vector.broadcast %19 : vector<1x128xf32> to vector<16x128xf32>
    %21 = arith.addf %18, %20 : vector<16x128xf32>
    %c0_17 = arith.constant 0 : index
    %c0_18 = arith.constant 0 : index
    %22 = vector.load %arg8[%c0_17, %c0_18] : memref<128x128xf32, #tpu.memory_space<vmem>>, vector<128x128xf32>
    %cst_19 = arith.constant dense<0.000000e+00> : vector<16x128xf32>
    %23 = tpu.matmul %9, %22, %cst_19 {dimension_numbers = #tpu.dot_dimension_numbers<[1], [0], [0], [1], [0, 0, 1, 1], [], []>} : vector<16x128xf32>, vector<128x128xf32>, vector<16x128xf32> -> vector<16x128xf32>
    %c0_20 = arith.constant 0 : index
    %c0_21 = arith.constant 0 : index
    %24 = vector.load %arg9[%c0_20, %c0_21] : memref<1x128xf32, #tpu.memory_space<vmem>>, vector<1x128xf32>
    %25 = vector.broadcast %24 : vector<1x128xf32> to vector<16x128xf32>
    %26 = arith.addf %23, %25 : vector<16x128xf32>
    %c0_22 = arith.constant 0 : index
    %c0_23 = arith.constant 0 : index
    %27 = vector.load %arg10[%c0_22, %c0_23] : memref<16x256xf32, #tpu.memory_space<vmem>>, vector<16x128xf32>
    tpu.vector_store %arg10[%c0_22, %c0_23], %21 {strides = array<i32>} : memref<16x256xf32, #tpu.memory_space<vmem>>, vector<16x128xf32>,
    %c0_24 = arith.constant 0 : index
    %c128 = arith.constant 128 : index
    %28 = vector.load %arg10[%c0_24, %c128] : memref<16x256xf32, #tpu.memory_space<vmem>>, vector<16x128xf32>
    tpu.vector_store %arg10[%c0_24, %c128], %26 {strides = array<i32>} : memref<16x256xf32, #tpu.memory_space<vmem>>, vector<16x128xf32>,
    return
  }
  func.func @transform_0(%arg0: i32) -> (i32, i32) {
    %c0_i32 = arith.constant 0 : i32
    %c0_i32_0 = arith.constant 0 : i32
    return %arg0, %c0_i32 : i32, i32
  }
  func.func @transform_1(%arg0: i32) -> (i32, i32) {
    %c0_i32 = arith.constant 0 : i32
    %c0_i32_0 = arith.constant 0 : i32
    %c0_i32_1 = arith.constant 0 : i32
    return %c0_i32, %c0_i32_0 : i32, i32
  }
  func.func @transform_2(%arg0: i32) -> (i32, i32) {
    %c0_i32 = arith.constant 0 : i32
    %c0_i32_0 = arith.constant 0 : i32
    %c0_i32_1 = arith.constant 0 : i32
    return %c0_i32, %c0_i32_0 : i32, i32
  }
  func.func @transform_3(%arg0: i32) -> (i32, i32) {
    %c0_i32 = arith.constant 0 : i32
    %c0_i32_0 = arith.constant 0 : i32
    %c0_i32_1 = arith.constant 0 : i32
    return %c0_i32, %c0_i32_0 : i32, i32
  }
  func.func @transform_4(%arg0: i32) -> (i32, i32) {
    %c0_i32 = arith.constant 0 : i32
    %c0_i32_0 = arith.constant 0 : i32
    %c0_i32_1 = arith.constant 0 : i32
    return %c0_i32, %c0_i32_0 : i32, i32
  }
  func.func @transform_5(%arg0: i32) -> (i32, i32) {
    %c0_i32 = arith.constant 0 : i32
    %c0_i32_0 = arith.constant 0 : i32
    %c0_i32_1 = arith.constant 0 : i32
    return %c0_i32, %c0_i32_0 : i32, i32
  }
  func.func @transform_6(%arg0: i32) -> (i32, i32) {
    %c0_i32 = arith.constant 0 : i32
    %c0_i32_0 = arith.constant 0 : i32
    %c0_i32_1 = arith.constant 0 : i32
    return %c0_i32, %c0_i32_0 : i32, i32
  }
  func.func @transform_7(%arg0: i32) -> (i32, i32) {
    %c0_i32 = arith.constant 0 : i32
    %c0_i32_0 = arith.constant 0 : i32
    %c0_i32_1 = arith.constant 0 : i32
    return %c0_i32, %c0_i32_0 : i32, i32
  }
  func.func @transform_8(%arg0: i32) -> (i32, i32) {
    %c0_i32 = arith.constant 0 : i32
    %c0_i32_0 = arith.constant 0 : i32
    %c0_i32_1 = arith.constant 0 : i32
    return %c0_i32, %c0_i32_0 : i32, i32
  }
  func.func @transform_9(%arg0: i32) -> (i32, i32) {
    %c0_i32 = arith.constant 0 : i32
    %c0_i32_0 = arith.constant 0 : i32
    return %arg0, %c0_i32 : i32, i32
  }
}

</mosaic_0001>

<bundles_post_ra>
// kernel: tpu_custom_call.1
= control target key start
LH: loop header
LB: loop body
LE: loop exit
PB: predicated region body
PF: predicated region fallthrough
CT: control target
= control target key end

     0   :  { %14 = vsyncpa [#allocation3], 0  ;;  %s681_s0 = inlined_call_operand.hbm [shape: f32[16,128], index: 0, kind: input, shape index: {}]   ;;  %s682_s1 = inlined_call_operand.hbm [shape: f32[128,256], index: 1, kind: input, shape index: {}]   ;;  %s683_s2 = inlined_call_operand.hbm [shape: f32[1,256], index: 2, kind: input, shape index: {}]   ;;  %s684_s3 = inlined_call_operand.hbm [shape: f32[128,128], index: 3, kind: input, shape index: {}]   ;;  %s685_s4 = inlined_call_operand.vmem [shape: f32[1,128], index: 4, kind: input, shape index: {}]   ;;  %s686_s5 = inlined_call_operand.hbm [shape: f32[128,128], index: 5, kind: input, shape index: {}]   ;;  %s687_s6 = inlined_call_operand.vmem [shape: f32[1,128], index: 6, kind: input, shape index: {}]   ;;  %s688_s7 = inlined_call_operand.hbm [shape: f32[128,128], index: 7, kind: input, shape index: {}]   ;;  %s689_s8 = inlined_call_operand.vmem [shape: f32[1,128], index: 8, kind: input, shape index: {}]   ;;  %s690_s9 = inlined_call_operand.hbm [shape: f32[16,256], index: 9, kind: output, shape index: {}]  }
   0x1   :  { %15 = vsyncpa [#allocation6], 0 }
   0x2   :  { %16 = vsyncpa [#allocation9], 0 }
   0x3   :  { %17 = vsyncpa [#allocation12], 0  ;;  %s36_s11 = sshll.u32 %s682_s1, 4  ;;  %s37_s11 = int_to_ptr.hbm [resolvable:$true] %s36_s11 }
   0x4   :  { %18 = vsyncpa [#allocation4], 0  ;;  %s580_s12 = smov [#allocation5]   ;;  %s581_s14 = smov 256  }
   0x5   :  { %s38_s13 = sshll.u32 %s580_s12, 4  ;;  %s582_s15 = smov 16   ;;  %s39_s13 = int_to_ptr.vmem [resolvable:$true] %s38_s13 }
   0x6   :  { %44 = dma.hbm_to_vmem [thread:$0]  %s37_s11, 4096, %s39_s13, [#allocation6], %s581_s14, %s581_s14, %s582_s15  }
   0x7   :  { %s60_s18 = sshll.u32 %s684_s3, 4  ;;  %s583_s19 = smov [#allocation8]   ;;  %s61_s18 = int_to_ptr.hbm [resolvable:$true] %s60_s18 }
   0x8   :  { %s62_s20 = sshll.u32 %s583_s19, 4  ;;  %s23_s22 = sshll.u32 %s681_s0, 4  ;;  %s63_s20 = int_to_ptr.vmem [resolvable:$true] %s62_s20  ;;  %s24_s22 = int_to_ptr.hbm [resolvable:$true] %s23_s22 }
   0x9   :  { %s584_s23 = smov 128   ;;  %s585_s24 = smov 8  }
   0xa   :  { %68 = dma.hbm_to_vmem [thread:$0]  %s61_s18, 2048, %s63_s20, [#allocation9], %s584_s23, %s584_s23, %s585_s24  }
   0xb   :  { %s50_s27 = sshll.u32 %s683_s2, 4  ;;  %s586_s28 = smov [#allocation2]   ;;  %s51_s27 = int_to_ptr.hbm [resolvable:$true] %s50_s27 }
   0xc   :  { %s25_s29 = sshll.u32 %s586_s28, 4  ;;  %s587_s3 = smov [#allocation7]   ;;  %s26_s29 = int_to_ptr.vmem [resolvable:$true] %s25_s29 }
   0xd   :  { %31 = dma.hbm_to_vmem [thread:$0]  %s24_s22, 256, %s26_s29, [#allocation3], %s584_s23, %s584_s23, %s585_s24  }
   0xe   :  { %s52_s30 = sshll.u32 %s587_s3, 4  ;;  %s75_s0 = sshll.u32 %s686_s5, 4  ;;  %s53_s30 = int_to_ptr.vmem [resolvable:$true] %s52_s30  ;;  %s76_s0 = int_to_ptr.hbm [resolvable:$true] %s75_s0 }
   0xf   :  { %55 = dma.hbm_to_vmem [thread:$0]  %s51_s27, 32, %s53_s30, [#allocation6]  }
  0x10   :  { %s90_s16 = sshll.u32 %s688_s7, 4  ;;  %s588_s17 = smov [#allocation10]   ;;  %s91_s16 = int_to_ptr.hbm [resolvable:$true] %s90_s16 }
  0x11   :  { %s77_s2 = sshll.u32 %s588_s17, 4  ;;  %s589_s18 = smov [#allocation11]   ;;  %s78_s2 = int_to_ptr.vmem [resolvable:$true] %s77_s2 }
  0x12   :  { %83 = dma.hbm_to_vmem [thread:$0]  %s76_s0, 2048, %s78_s2, [#allocation9], %s584_s23, %s584_s23, %s585_s24  }
  0x13   :  { %s92_s19 = sshll.u32 %s589_s18, 4  ;;  %s93_s19 = int_to_ptr.vmem [resolvable:$true] %s92_s19 }
  0x14   :  { %98 = dma.hbm_to_vmem [thread:$0]  %s91_s16, 2048, %s93_s19, [#allocation12], %s584_s23, %s584_s23, %s585_s24  }
  0x15   :  { %570 = dma.done.wait [#allocation3], 256  }
  0x16   :  { %571 = vsyncadd [#allocation3], 4294967040 }
  0x17   :  { %572 = dma.done.wait [#allocation6], 4128  }
  0x18   :  { %573 = vsyncadd [#allocation6], 4294963168 }
  0x19   :  { %574 = dma.done.wait [#allocation9], 4096  }
  0x1a   :  { %575 = vsyncadd [#allocation9], 4294963200 }
  0x1b   :  { %576 = dma.done.wait [#allocation12], 2048  }
  0x1c   :  { %577 = vsyncadd [#allocation12], 4294965248  ;;  %v157_v0 = vld [vmem:[#allocation5 + $0xf0] sm:$0xff]  ;;  %v155_v1 = vld [vmem:[#allocation5 + $0xe0] sm:$0xff]  ;;  %s590_s22 = smov [#allocation13]   ;;  %s356_s26 = sshll.u32 %s690_s9, 4  ;;  %s357_s26 = int_to_ptr.hbm [resolvable:$true] %s356_s26 }
  0x1d   :  { %165 = vmatpush.msra.mxu0 %v157_v0  ;;  %v153_v2 = vld [vmem:[#allocation5 + $0xd0] sm:$0xff]  ;;  %v151_v3 = vld [vmem:[#allocation5 + $0xc0] sm:$0xff]  ;;  %v158_v10 = vld [vmem:[#allocation5 + $0xf8] sm:$0xff]  ;;  %s354_s23 = sshll.u32 %s590_s22, 4  ;;  %s355_s23 = int_to_ptr.vmem [resolvable:$true] %s354_s23 }
  0x1e   :  { %v149_v4 = vld [vmem:[#allocation5 + $0xb0] sm:$0xff]  ;;  %v147_v5 = vld [vmem:[#allocation5 + $0xa0] sm:$0xff]  ;;  %v156_v11 = vld [vmem:[#allocation5 + $0xe8] sm:$0xff]  ;;  %188 = vmatpush.msra.mxu1 %v158_v10 }
  0x1f   :  { %166 = vmatpush.msra.mxu0 %v155_v1  ;;  %v230_v6 = vld [vmem:[#allocation8 + $0x78] sm:$0xff]  ;;  %v229_v7 = vld [vmem:[#allocation8 + $0x70] sm:$0xff]  ;;  %v228_v9 = vld [vmem:[#allocation8 + $0x68] sm:$0xff] }
  0x20   :  { %235 = vmatpush.msra.mxu2 %v230_v6  ;;  %v145_v8 = vld [vmem:[#allocation5 + $0x90] sm:$0xff]  ;;  %v143_v12 = vld [vmem:[#allocation5 + $0x80] sm:$0xff]  ;;  %v154_v14 = vld [vmem:[#allocation5 + $0xd8] sm:$0xff]  ;;  %189 = vmatpush.msra.mxu1 %v156_v11 }
  0x21   :  { %167 = vmatpush.msra.mxu0 %v153_v2  ;;  %v227_v13 = vld [vmem:[#allocation8 + $0x60] sm:$0xff]  ;;  %v141_v15 = vld [vmem:[#allocation5 + $0x70] sm:$0xff]  ;;  %v226_v16 = vld [vmem:[#allocation8 + $0x58] sm:$0xff] }
  0x22   :  { %236 = vmatpush.msra.mxu2 %v229_v7  ;;  %v152_v17 = vld [vmem:[#allocation5 + $0xc8] sm:$0xff]  ;;  %v139_v18 = vld [vmem:[#allocation5 + $0x60] sm:$0xff]  ;;  %v225_v19 = vld [vmem:[#allocation8 + $0x50] sm:$0xff]  ;;  %190 = vmatpush.msra.mxu1 %v154_v14 }
  0x23   :  { %168 = vmatpush.msra.mxu0 %v151_v3  ;;  %v150_v20 = vld [vmem:[#allocation5 + $0xb8] sm:$0xff]  ;;  %v137_v21 = vld [vmem:[#allocation5 + $0x50] sm:$0xff]  ;;  %v148_v23 = vld [vmem:[#allocation5 + $0xa8] sm:$0xff] }
  0x24   :  { %237 = vmatpush.msra.mxu2 %v228_v9  ;;  %v224_v22 = vld [vmem:[#allocation8 + $0x48] sm:$0xff]  ;;  %191 = vmatpush.msra.mxu1 %v152_v17  ;;  %v135_v24 = vld [vmem:[#allocation5 + $0x40] sm:$0xff]  ;;  %v146_v26 = vld [vmem:[#allocation5 + $0x98] sm:$0xff] }
  0x25   :  { %169 = vmatpush.msra.mxu0 %v149_v4  ;;  %v223_v25 = vld [vmem:[#allocation8 + $0x40] sm:$0xff]  ;;  %v133_v27 = vld [vmem:[#allocation5 + $0x30] sm:$0xff]  ;;  %v222_v28 = vld [vmem:[#allocation8 + $0x38] sm:$0xff] }
  0x26   :  { %238 = vmatpush.msra.mxu2 %v227_v13  ;;  %192 = vmatpush.msra.mxu1 %v150_v20  ;;  %v131_v29 = vld [vmem:[#allocation5 + $0x20] sm:$0xff]  ;;  %v221_v30 = vld [vmem:[#allocation8 + $0x30] sm:$0xff]  ;;  %v220_v32 = vld [vmem:[#allocation8 + $0x28] sm:$0xff] }
  0x27   :  { %170 = vmatpush.msra.mxu0 %v147_v5  ;;  %v129_v31 = vld [vmem:[#allocation5 + $0x10] sm:$0xff]  ;;  %v127_v33 = vld [vmem:[#allocation5] sm:$0xff]  ;;  %v126_v37 = vld [vmem:[#allocation2 + $0x8] sm:$0xff] }
  0x28   :  { %239 = vmatpush.msra.mxu2 %v226_v16  ;;  %193 = vmatpush.msra.mxu1 %v148_v23  ;;  %v219_v34 = vld [vmem:[#allocation8 + $0x20] sm:$0xff]  ;;  %v125_v35 = vld [vmem:[#allocation2] sm:$0xff]  ;;  %v218_v36 = vld [vmem:[#allocation8 + $0x18] sm:$0xff] }
  0x29   :  { %171 = vmatpush.msra.mxu0 %v145_v8  ;;  %v144_v38 = vld [vmem:[#allocation5 + $0x88] sm:$0xff]  ;;  %v217_v39 = vld [vmem:[#allocation8 + $0x10] sm:$0xff]  ;;  %v275_v50 = vld [vmem:[#allocation10 + $0x78] sm:$0xff] }
  0x2a   :  { %240 = vmatpush.msra.mxu2 %v225_v19  ;;  %194 = vmatpush.msra.mxu1 %v146_v26  ;;  %v142_v40 = vld [vmem:[#allocation5 + $0x78] sm:$0xff]  ;;  %v216_v41 = vld [vmem:[#allocation8 + $0x8] sm:$0xff]  ;;  %v215_v43 = vld [vmem:[#allocation8] sm:$0xff] }
  0x2b   :  { %172 = vmatpush.msra.mxu0 %v143_v12  ;;  %v140_v42 = vld [vmem:[#allocation5 + $0x68] sm:$0xff]  ;;  %v138_v44 = vld [vmem:[#allocation5 + $0x58] sm:$0xff]  ;;  %280 = vmatpush.msra.mxu3 %v275_v50  ;;  %v662_v0 = vld [vmem:[#allocation7] sm:$0x3] }
  0x2c   :  { %241 = vmatpush.msra.mxu2 %v224_v22  ;;  %195 = vmatpush.msra.mxu1 %v144_v38  ;;  %v136_v45 = vld [vmem:[#allocation5 + $0x48] sm:$0xff]  ;;  %v134_v46 = vld [vmem:[#allocation5 + $0x38] sm:$0xff]  ;;  %v161_v4 = vperm.slane %v662_v0, 0  ;;  %v162_v23 = vperm.slane %v662_v0, 1 }
  0x2d   :  { %173 = vmatpush.msra.mxu0 %v141_v15  ;;  %v132_v47 = vld [vmem:[#allocation5 + $0x28] sm:$0xff]  ;;  %v130_v48 = vld [vmem:[#allocation5 + $0x18] sm:$0xff] }
  0x2e   :  { %242 = vmatpush.msra.mxu2 %v223_v25  ;;  %196 = vmatpush.msra.mxu1 %v142_v40  ;;  %v128_v49 = vld [vmem:[#allocation5 + $0x8] sm:$0xff]  ;;  %v274_v51 = vld [vmem:[#allocation10 + $0x70] sm:$0xff]  ;;  %v318_v53 = vld [vmem:[#allocation11 + $0x78] sm:$0xff] }
  0x2f   :  { %174 = vmatpush.msra.mxu0 %v139_v18  ;;  %v273_v52 = vld [vmem:[#allocation10 + $0x68] sm:$0xff]  ;;  %281 = vmatpush.msra.mxu3 %v274_v51  ;;  %v317_v54 = vld [vmem:[#allocation11 + $0x70] sm:$0xff]  ;;  %v272_v55 = vld [vmem:[#allocation10 + $0x60] sm:$0xff] }
  0x30   :  { %243 = vmatpush.msra.mxu2 %v222_v28  ;;  %197 = vmatpush.msra.mxu1 %v140_v42  ;;  %v316_v56 = vld [vmem:[#allocation11 + $0x68] sm:$0xff]  ;;  %v271_v57 = vld [vmem:[#allocation10 + $0x58] sm:$0xff]  ;;  %v315_v58 = vld [vmem:[#allocation11 + $0x60] sm:$0xff] }
  0x31   :  { %175 = vmatpush.msra.mxu0 %v137_v21  ;;  %282 = vmatpush.msra.mxu3 %v273_v52  ;;  %v270_v59 = vld [vmem:[#allocation10 + $0x50] sm:$0xff]  ;;  %v314_v60 = vld [vmem:[#allocation11 + $0x58] sm:$0xff]  ;;  %v269_v61 = vld [vmem:[#allocation10 + $0x48] sm:$0xff] }
  0x32   :  { %244 = vmatpush.msra.mxu2 %v221_v30  ;;  %198 = vmatpush.msra.mxu1 %v138_v44  ;;  %v313_v62 = vld [vmem:[#allocation11 + $0x50] sm:$0xff]  ;;  %v268_v63 = vld [vmem:[#allocation10 + $0x40] sm:$0xff]  ;;  %v312_v1 = vld [vmem:[#allocation11 + $0x48] sm:$0xff] }
  0x33   :  { %176 = vmatpush.msra.mxu0 %v135_v24  ;;  %283 = vmatpush.msra.mxu3 %v272_v55  ;;  %v267_v2 = vld [vmem:[#allocation10 + $0x38] sm:$0xff]  ;;  %v311_v3 = vld [vmem:[#allocation11 + $0x40] sm:$0xff]  ;;  %v266_v5 = vld [vmem:[#allocation10 + $0x30] sm:$0xff] }
  0x34   :  { %245 = vmatpush.msra.mxu2 %v220_v32  ;;  %199 = vmatpush.msra.mxu1 %v136_v45  ;;  %v310_v6 = vld [vmem:[#allocation11 + $0x38] sm:$0xff]  ;;  %v265_v7 = vld [vmem:[#allocation10 + $0x28] sm:$0xff]  ;;  %v309_v9 = vld [vmem:[#allocation11 + $0x30] sm:$0xff] }
  0x35   :  { %177 = vmatpush.msra.mxu0 %v133_v27  ;;  %284 = vmatpush.msra.mxu3 %v271_v57  ;;  %v264_v11 = vld [vmem:[#allocation10 + $0x20] sm:$0xff]  ;;  %v263_v13 = vld [vmem:[#allocation10 + $0x18] sm:$0xff]  ;;  %v262_v17 = vld [vmem:[#allocation10 + $0x10] sm:$0xff] }
  0x36   :  { %246 = vmatpush.msra.mxu2 %v219_v34  ;;  %200 = vmatpush.msra.mxu1 %v134_v46  ;;  %v308_v18 = vld [vmem:[#allocation11 + $0x28] sm:$0xff]  ;;  %v307_v20 = vld [vmem:[#allocation11 + $0x20] sm:$0xff]  ;;  %v306_v22 = vld [vmem:[#allocation11 + $0x18] sm:$0xff] }
  0x37   :  { %178 = vmatpush.msra.mxu0 %v131_v29  ;;  %285 = vmatpush.msra.mxu3 %v270_v59  ;;  %v261_v19 = vld [vmem:[#allocation10 + $0x8] sm:$0xff]  ;;  %v260_v21 = vld [vmem:[#allocation10] sm:$0xff]  ;;  %v305_v24 = vld [vmem:[#allocation11 + $0x10] sm:$0xff] }
  0x38   :  { %247 = vmatpush.msra.mxu2 %v218_v36  ;;  %201 = vmatpush.msra.mxu1 %v132_v47  ;;  %v304_v27 = vld [vmem:[#allocation11 + $0x8] sm:$0xff]  ;;  %v303_v29 = vld [vmem:[#allocation11] sm:$0xff] }
  0x39   :  { %179 = vmatpush.msra.mxu0 %v129_v31  ;;  %286 = vmatpush.msra.mxu3 %v269_v61  ;;  %v401_v40 = vld [vmem:[%s689_s8] ss:$0 sm:$0xff] }
  0x3a   :  { %248 = vmatpush.msra.mxu2 %v217_v39  ;;  %202 = vmatpush.msra.mxu1 %v130_v48  ;;  %v400_v45 = vld [vmem:[%s687_s6] ss:$0 sm:$0xff] }
  0x3b   :  { %180 = vmatpush.msra.mxu0 %v127_v33  ;;  %287 = vmatpush.msra.mxu3 %v268_v63  ;;  %v399_v33 = vld [vmem:[%s685_s4] ss:$0 sm:$0xff] }
  0x3c   :  { %181 = vmatmul.f32.vlgmr.msra.gmra.mxu0 %v125_v35  ;;  %249 = vmatpush.msra.mxu2 %v216_v41 }
  0x3d   :  { %203 = vmatpush.msra.mxu1 %v128_v49  ;;  %323 = vmatpush.msrb.mxu0 %v318_v53 }
  0x3e   :  { %250 = vmatpush.msra.mxu2 %v215_v43  ;;  %204 = vmatmul.f32.vlgmr.msra.gmra.mxu1 %v125_v35 }
  0x3f   :  { %372 = vmatpush.msrb.mxu1 %v318_v53  ;;  %324 = vmatpush.msrb.mxu0 %v317_v54 }
  0x40   :  { %288 = vmatpush.msra.mxu3 %v267_v2 }
  0x41   :  { %373 = vmatpush.msrb.mxu1 %v317_v54  ;;  %325 = vmatpush.msrb.mxu0 %v316_v56 }
  0x42   :  { %289 = vmatpush.msra.mxu3 %v266_v5 }
  0x43   :  { %374 = vmatpush.msrb.mxu1 %v316_v56  ;;  %326 = vmatpush.msrb.mxu0 %v315_v58 }
  0x44   :  { %184 = vmatmul.f32.gmra.mxu0 %v126_v37  ;;  %290 = vmatpush.msra.mxu3 %v265_v7 }
  0x45   :  { %375 = vmatpush.msrb.mxu1 %v315_v58  ;;  %327 = vmatpush.msrb.mxu0 %v314_v60 }
  0x46   :  { %207 = vmatmul.f32.gmra.mxu1 %v126_v37  ;;  %291 = vmatpush.msra.mxu3 %v264_v11 }
  0x47   :  { %376 = vmatpush.msrb.mxu1 %v314_v60  ;;  %328 = vmatpush.msrb.mxu0 %v313_v62 }
  0x48   :  { %292 = vmatpush.msra.mxu3 %v263_v13 }
  0x49   :  { %377 = vmatpush.msrb.mxu1 %v313_v62  ;;  %329 = vmatpush.msrb.mxu0 %v312_v1 }
  0x4a   :  { %293 = vmatpush.msra.mxu3 %v262_v17 }
  0x4b   :  { %378 = vmatpush.msrb.mxu1 %v312_v1  ;;  %330 = vmatpush.msrb.mxu0 %v311_v3 }
  0x4c   :  { %294 = vmatpush.msra.mxu3 %v261_v19 }
  0x4d   :  { %379 = vmatpush.msrb.mxu1 %v311_v3  ;;  %331 = vmatpush.msrb.mxu0 %v310_v6 }
  0x4e   :  { %295 = vmatpush.msra.mxu3 %v260_v21 }
  0x4f   :  { %380 = vmatpush.msrb.mxu1 %v310_v6  ;;  %332 = vmatpush.msrb.mxu0 %v309_v9 }
  0x51   :  { %381 = vmatpush.msrb.mxu1 %v309_v9  ;;  %333 = vmatpush.msrb.mxu0 %v308_v18 }
  0x53   :  { %382 = vmatpush.msrb.mxu1 %v308_v18  ;;  %334 = vmatpush.msrb.mxu0 %v307_v20 }
  0x55   :  { %383 = vmatpush.msrb.mxu1 %v307_v20  ;;  %335 = vmatpush.msrb.mxu0 %v306_v22 }
  0x57   :  { %384 = vmatpush.msrb.mxu1 %v306_v22  ;;  %336 = vmatpush.msrb.mxu0 %v305_v24 }
  0x59   :  { %385 = vmatpush.msrb.mxu1 %v305_v24  ;;  %337 = vmatpush.msrb.mxu0 %v304_v27 }
  0x5b   :  { %386 = vmatpush.msrb.mxu1 %v304_v27  ;;  %338 = vmatpush.msrb.mxu0 %v303_v29 }
  0x5d   :  { %387 = vmatpush.msrb.mxu1 %v303_v29 }
  0xb9   :  { %v182_v8 = vpop.f32.mrf.mxu0 }
  0xba   :  { %v183_v10 = vadd.f32 %v182_v8, %v161_v4 }
  0xbb   :  { %v205_v25 = vpop.f32.mrf.mxu1 }
  0xbc   :  { %v211_v12 = vmax.f32 %v183_v10, 0.0  ;;  %v206_v26 = vadd.f32 %v205_v25, %v162_v23 }
  0xbe   :  { %251 = vmatmul.f32.vlgmr.msra.gmra.mxu2 %v211_v12  ;;  %v212_v28 = vmax.f32 %v206_v26, 0.0 }
  0xc0   :  { %339 = vmatmul.f32.vlgmr.msrb.gmra.mxu0 %v212_v28 }
  0xc1   :  { %v185_v14 = vpop.f32.mrf.mxu0 }
  0xc2   :  { %v186_v15 = vadd.f32 %v185_v14, %v161_v4 }
  0xc3   :  { %v208_v30 = vpop.f32.mrf.mxu1 }
  0xc4   :  { %v213_v16 = vmax.f32 %v186_v15, 0.0  ;;  %v209_v31 = vadd.f32 %v208_v30, %v162_v23 }
  0xc6   :  { %254 = vmatmul.f32.gmra.mxu2 %v213_v16  ;;  %v214_v32 = vmax.f32 %v209_v31, 0.0 }
  0xc8   :  { %342 = vmatmul.f32.vlgmr.msrb.gmra.mxu1 %v214_v32 }
 0x13d   :  { %v340_v41 = vpop.f32.mrf.mxu0 }
 0x13e   :  { %v341_v42 = vadd.f32 %v401_v40, %v340_v41 }
 0x140   :  { %348 = vst [vmem:[#allocation13 + $0x8] sm:$0xff] %v341_v42 }
 0x141   :  { %v252_v34 = vpop.f32.mrf.mxu2 }
 0x142   :  { %v253_v35 = vadd.f32 %v399_v33, %v252_v34 }
 0x144   :  { %v258_v36 = vmax.f32 %v253_v35, 0.0 }
 0x145   :  { %v343_v43 = vpop.f32.mrf.mxu1 }
 0x146   :  { %296 = vmatmul.f32.vlgmr.msra.gmra.mxu3 %v258_v36  ;;  %v344_v44 = vadd.f32 %v401_v40, %v343_v43 }
 0x148   :  { %349 = vst [vmem:[#allocation13 + $0x18] sm:$0xff] %v344_v44 }
 0x149   :  { %v255_v37 = vpop.f32.mrf.mxu2 }
 0x14a   :  { %v256_v38 = vadd.f32 %v399_v33, %v255_v37 }
 0x14c   :  { %v259_v39 = vmax.f32 %v256_v38, 0.0 }
 0x14e   :  { %299 = vmatmul.f32.gmra.mxu3 %v259_v39 }
 0x1c9   :  { %v297_v46 = vpop.f32.mrf.mxu3 }
 0x1ca   :  { %v298_v47 = vadd.f32 %v400_v45, %v297_v46 }
 0x1cc   :  { %346 = vst [vmem:[#allocation13] sm:$0xff] %v298_v47 }
 0x1d1   :  { %v300_v48 = vpop.f32.mrf.mxu3 }
 0x1d2   :  { %v301_v49 = vadd.f32 %v400_v45, %v300_v48 }
 0x1d4   :  { %347 = vst [vmem:[#allocation13 + $0x10] sm:$0xff] %v301_v49 }
 0x1d5   :  { %362 = dma.vmem_to_hbm [thread:$0]  %s355_s23, 512, %s357_s26, [#allocation4], %s581_s14, %s581_s14, %s582_s15  }
 0x1d6   :  { %578 = dma.done.wait [#allocation4], 512  }
 0x1d7   :  { %579 = vsyncadd [#allocation4], 4294966784 }
 0x1d8   :  { %367 = vsyncpa [#allocation3], 1 }
 0x1d9   :  { %368 = vsyncpa [#allocation6], 1 }
 0x1da   :  { %369 = vsyncpa [#allocation9], 1 }
 0x1db   :  { %370 = vsyncpa [#allocation12], 1 }
 0x1dc   :  { %371 = vsyncpa [#allocation4], 1 }

</bundles_post_ra>
